<compile_context>
chip_gen: v5e
topology: v5e:2x2
jax: 0.10.0
libtpu: 0.0.40
codegen_flags: <defaults>
</compile_context>

<pallas_src>
import jax
import jax.numpy as jnp
from jax.experimental import pallas as pl
from jax.experimental.pallas import tpu as pltpu

LEAKY_SLOPE = 0.2
BN_EPS = 1e-5  # torch BatchNorm1d default eps


def _out_len(l, k, s):
    return (l - k) // s + 1


def _make_kernel(batch, lens):
    """Build the Pallas kernel body for fixed batch size and per-layer lengths."""
    B = batch
    L1, L2, L3, L4, L5 = lens

    def leaky(v):
        return jnp.maximum(v, LEAKY_SLOPE * v)

    def gather_cols(src_ref, k_size, l_out):
        """im2col for a stride-2 VALID conv from a 2D (L_in*B, C_in) scratch.

        Returns (l_out*B, k_size*C_in); row = t*B + b, columns ordered (k, c_in).
        All slices are static & contiguous (the B batch rows at input position
        2*t + k), so this is pure data movement — one matmul per layer follows.
        """
        taps = []
        for k in range(k_size):
            pieces = [src_ref[pl.ds((2 * t + k) * B, B), :] for t in range(l_out)]
            taps.append(pieces[0] if l_out == 1 else jnp.concatenate(pieces, axis=0))
        return taps[0] if k_size == 1 else jnp.concatenate(taps, axis=-1)

    def bn_leaky(y, g_ref, b_ref):
        # Training-mode BatchNorm1d (biased stats over N and L), folded into a
        # single per-channel scale/shift; mean and E[x^2] in one pass.
        mean = jnp.mean(y, axis=0, keepdims=True)                    # (1, C)
        var = jnp.mean(y * y, axis=0, keepdims=True) - mean * mean   # (1, C)
        scale = g_ref[...] * jax.lax.rsqrt(var + BN_EPS)
        shift = b_ref[...] - mean * scale
        return leaky(y * scale + shift)

    def kernel(xcol_ref, w1_ref, w2_ref, w3_ref, w4_ref, w5_ref,
               g2_ref, b2_ref, g3_ref, b3_ref, g4_ref, b4_ref,
               out_ref, a1, a2, a3, a4):
        # --- layer 1: Conv1d(1, 16, 5, 2) + LeakyReLU ------------------------
        # C_in == 1: weighted sum of the 5 pre-gathered input taps on the VPU.
        xcol = xcol_ref[...]                              # (L1*B, 5)
        w1 = w1_ref[...]                                  # (5, 16)
        h1 = xcol[:, 0:1] * w1[0:1, :]
        for k in range(1, 5):
            h1 = h1 + xcol[:, k:k + 1] * w1[k:k + 1, :]
        a1[...] = leaky(h1)                               # (L1*B, 16)

        # --- layer 2: Conv1d(16, 32, 3, 2) + BN + LeakyReLU — one matmul -----
        col2 = gather_cols(a1, 3, L2)                     # (L2*B, 48)
        h2 = jnp.dot(col2, w2_ref[...], preferred_element_type=jnp.float32)
        a2[...] = bn_leaky(h2, g2_ref, b2_ref)            # (L2*B, 32)

        # --- layer 3: Conv1d(32, 64, 3, 2) + BN + LeakyReLU — one matmul -----
        col3 = gather_cols(a2, 3, L3)                     # (L3*B, 96)
        h3 = jnp.dot(col3, w3_ref[...], preferred_element_type=jnp.float32)
        a3[...] = bn_leaky(h3, g3_ref, b3_ref)            # (L3*B, 64)

        # --- layer 4: Conv1d(64, 128, 1, 2) + BN + LeakyReLU — one matmul ----
        col4 = gather_cols(a3, 1, L4)                     # (L4*B, 64)
        h4 = jnp.dot(col4, w4_ref[...], preferred_element_type=jnp.float32)
        a4[...] = bn_leaky(h4, g4_ref, b4_ref)            # (L4*B, 128)

        # --- layer 5: Conv1d(128, 1, 1, 2) + Sigmoid -------------------------
        # C_out == 1: broadcast multiply + lane reduction instead of a matmul.
        w5 = w5_ref[...]                                  # (1, 128)
        cols = []
        for t in range(L5):
            sel = a4[pl.ds(2 * t * B, B), :]              # (B, 128)
            cols.append(jnp.sum(sel * w5, axis=-1, keepdims=True))   # (B, 1)
        z = cols[0] if L5 == 1 else jnp.concatenate(cols, axis=-1)   # (B, L5)
        out_ref[...] = 1.0 / (1.0 + jnp.exp(-z))

    return kernel


def discriminator_forward(x, params):
    """x: (B, 1, L) float32 (NCW, like the torch module). Returns torch-equivalent output."""
    B, c_in, L = x.shape
    assert c_in == 1
    L1 = _out_len(L, 5, 2)
    L2 = _out_len(L1, 3, 2)
    L3 = _out_len(L2, 3, 2)
    L4 = _out_len(L3, 1, 2)
    L5 = _out_len(L4, 1, 2)

    x2 = x[:, 0, :].astype(jnp.float32)                            # (B, L)
    # Layer-1 im2col built wrapper-side (layout plumbing, no compute hoisted):
    # xcol[t*B + b, k] = x[b, 0, 2*t + k]
    idx = 2 * jnp.arange(L1)[:, None] + jnp.arange(5)[None, :]     # (L1, 5)
    xcol = jnp.transpose(x2[:, idx], (1, 0, 2)).reshape(L1 * B, 5)

    def wflat(w):  # torch (C_out, C_in, K) -> (K*C_in, C_out), rows ordered (k, c_in)
        c_out, ci, k = w.shape
        return jnp.transpose(w, (2, 1, 0)).reshape(k * ci, c_out).astype(jnp.float32)

    args = (
        xcol,
        wflat(params["w1"]),                                       # (5, 16)
        wflat(params["w2"]),                                       # (48, 32)
        wflat(params["w3"]),                                       # (96, 64)
        wflat(params["w4"]),                                       # (64, 128)
        params["w5"][:, :, 0].astype(jnp.float32),                 # (1, 128)
        params["g2"][None, :].astype(jnp.float32), params["b2"][None, :].astype(jnp.float32),
        params["g3"][None, :].astype(jnp.float32), params["b3"][None, :].astype(jnp.float32),
        params["g4"][None, :].astype(jnp.float32), params["b4"][None, :].astype(jnp.float32),
    )

    kernel = _make_kernel(B, (L1, L2, L3, L4, L5))
    out = pl.pallas_call(
        kernel,
        out_shape=jax.ShapeDtypeStruct((B, L5), jnp.float32),
        in_specs=[pl.BlockSpec(memory_space=pltpu.MemorySpace.VMEM)] * len(args),
        out_specs=pl.BlockSpec(memory_space=pltpu.MemorySpace.VMEM),
        scratch_shapes=[
            pltpu.VMEM((L1 * B, 16), jnp.float32),
            pltpu.VMEM((L2 * B, 32), jnp.float32),
            pltpu.VMEM((L3 * B, 64), jnp.float32),
            pltpu.VMEM((L4 * B, 128), jnp.float32),
        ],
    )(*args)

    out = out[:, None, :]                                          # (B, 1, L5) NCW
    if out.shape[-1] == 1:                                         # torch.squeeze(x, dim=-1)
        out = jnp.squeeze(out, axis=-1)
    return out


# -------------------- pure-JAX reference (for verification) --------------------
def _ref_forward(x, params):
    def conv(h, w, stride):
        return jax.lax.conv_general_dilated(
            h, w, (stride,), "VALID", dimension_numbers=("NCH", "OIH", "NCH"))

    def bn(h, g, b):
        mean = jnp.mean(h, axis=(0, 2), keepdims=True)
        var = jnp.mean((h - mean) ** 2, axis=(0, 2), keepdims=True)
        return (h - mean) / jnp.sqrt(var + BN_EPS) * g[None, :, None] + b[None, :, None]

    def leaky(h):
        return jnp.where(h > 0, h, LEAKY_SLOPE * h)

    h = leaky(conv(x, params["w1"], 2))
    h = leaky(bn(conv(h, params["w2"], 2), params["g2"], params["b2"]))
    h = leaky(bn(conv(h, params["w3"], 2), params["g3"], params["b3"]))
    h = leaky(bn(conv(h, params["w4"], 2), params["g4"], params["b4"]))
    h = jax.nn.sigmoid(conv(h, params["w5"], 2))
    if h.shape[-1] == 1:
        h = jnp.squeeze(h, axis=-1)
    return h


def _init_params(key):
    """Deterministic init mimicking torch Conv1d default (uniform ±1/sqrt(fan_in))."""
    def conv_w(k, c_out, c_in, ksz):
        bound = 1.0 / (c_in * ksz) ** 0.5
        return jax.random.uniform(k, (c_out, c_in, ksz), jnp.float32, -bound, bound)

    ks = jax.random.split(key, 5)
    return {
        "w1": conv_w(ks[0], 16, 1, 5),
        "w2": conv_w(ks[1], 32, 16, 3),
        "w3": conv_w(ks[2], 64, 32, 3),
        "w4": conv_w(ks[3], 128, 64, 1),
        "w5": conv_w(ks[4], 1, 128, 1),
        "g2": jnp.ones((32,), jnp.float32), "b2": jnp.zeros((32,), jnp.float32),
        "g3": jnp.ones((64,), jnp.float32), "b3": jnp.zeros((64,), jnp.float32),
        "g4": jnp.ones((128,), jnp.float32), "b4": jnp.zeros((128,), jnp.float32),
    }


if __name__ == "__main__":
    key = jax.random.PRNGKey(0)
    k_x, k_p = jax.random.split(key)

    B, input_size = 4, 40            # input_size=40 => final spatial length 1 (squeeze removes it)
    x = jax.random.normal(k_x, (B, 1, input_size), jnp.float32)
    params = _init_params(k_p)

    out = jax.jit(discriminator_forward)(x, params)
    out = jax.block_until_ready(out)

    ref = _ref_forward(x, params)
    assert out.shape == ref.shape == (B, 1), (out.shape, ref.shape)
    assert jnp.allclose(out, ref, rtol=1e-4, atol=1e-4), (out, ref)

    print("KERNEL_OK")
</pallas_src>

<mosaic_0001>
module attributes {stable_mosaic.version = 11 : i64} {
  func.func @kernel(%arg0: memref<72x5xf32, #tpu.memory_space<vmem>>, %arg1: memref<5x16xf32, #tpu.memory_space<vmem>>, %arg2: memref<48x32xf32, #tpu.memory_space<vmem>>, %arg3: memref<96x64xf32, #tpu.memory_space<vmem>>, %arg4: memref<64x128xf32, #tpu.memory_space<vmem>>, %arg5: memref<1x128xf32, #tpu.memory_space<vmem>>, %arg6: memref<1x32xf32, #tpu.memory_space<vmem>>, %arg7: memref<1x32xf32, #tpu.memory_space<vmem>>, %arg8: memref<1x64xf32, #tpu.memory_space<vmem>>, %arg9: memref<1x64xf32, #tpu.memory_space<vmem>>, %arg10: memref<1x128xf32, #tpu.memory_space<vmem>>, %arg11: memref<1x128xf32, #tpu.memory_space<vmem>>, %arg12: memref<4x1xf32, #tpu.memory_space<vmem>>, %arg13: memref<72x16xf32, #tpu.memory_space<vmem>>, %arg14: memref<32x32xf32, #tpu.memory_space<vmem>>, %arg15: memref<12x64xf32, #tpu.memory_space<vmem>>, %arg16: memref<8x128xf32, #tpu.memory_space<vmem>>) attributes {dimension_semantics = [], scalar_prefetch = 0 : i64, scratch_operands = 4 : i64, tpu.core_type = #tpu.core_type<tc>} {
    %c0 = arith.constant 0 : index
    %c0_0 = arith.constant 0 : index
    %0 = vector.load %arg0[%c0, %c0_0] : memref<72x5xf32, #tpu.memory_space<vmem>>, vector<72x5xf32>
    %c0_1 = arith.constant 0 : index
    %c0_2 = arith.constant 0 : index
    %1 = vector.load %arg1[%c0_1, %c0_2] : memref<5x16xf32, #tpu.memory_space<vmem>>, vector<5x16xf32>
    %2 = vector.extract_strided_slice %0 {offsets = [0, 0], sizes = [72, 1], strides = [1, 1]} : vector<72x5xf32> to vector<72x1xf32>
    %3 = vector.extract_strided_slice %1 {offsets = [0, 0], sizes = [1, 16], strides = [1, 1]} : vector<5x16xf32> to vector<1x16xf32>
    %4 = vector.broadcast %2 : vector<72x1xf32> to vector<72x16xf32>
    %5 = vector.broadcast %3 : vector<1x16xf32> to vector<72x16xf32>
    %6 = arith.mulf %4, %5 : vector<72x16xf32>
    %7 = vector.extract_strided_slice %0 {offsets = [0, 1], sizes = [72, 1], strides = [1, 1]} : vector<72x5xf32> to vector<72x1xf32>
    %8 = vector.extract_strided_slice %1 {offsets = [1, 0], sizes = [1, 16], strides = [1, 1]} : vector<5x16xf32> to vector<1x16xf32>
    %9 = vector.broadcast %7 : vector<72x1xf32> to vector<72x16xf32>
    %10 = vector.broadcast %8 : vector<1x16xf32> to vector<72x16xf32>
    %11 = arith.mulf %9, %10 : vector<72x16xf32>
    %12 = arith.addf %6, %11 : vector<72x16xf32>
    %13 = vector.extract_strided_slice %0 {offsets = [0, 2], sizes = [72, 1], strides = [1, 1]} : vector<72x5xf32> to vector<72x1xf32>
    %14 = vector.extract_strided_slice %1 {offsets = [2, 0], sizes = [1, 16], strides = [1, 1]} : vector<5x16xf32> to vector<1x16xf32>
    %15 = vector.broadcast %13 : vector<72x1xf32> to vector<72x16xf32>
    %16 = vector.broadcast %14 : vector<1x16xf32> to vector<72x16xf32>
    %17 = arith.mulf %15, %16 : vector<72x16xf32>
    %18 = arith.addf %12, %17 : vector<72x16xf32>
    %19 = vector.extract_strided_slice %0 {offsets = [0, 3], sizes = [72, 1], strides = [1, 1]} : vector<72x5xf32> to vector<72x1xf32>
    %20 = vector.extract_strided_slice %1 {offsets = [3, 0], sizes = [1, 16], strides = [1, 1]} : vector<5x16xf32> to vector<1x16xf32>
    %21 = vector.broadcast %19 : vector<72x1xf32> to vector<72x16xf32>
    %22 = vector.broadcast %20 : vector<1x16xf32> to vector<72x16xf32>
    %23 = arith.mulf %21, %22 : vector<72x16xf32>
    %24 = arith.addf %18, %23 : vector<72x16xf32>
    %25 = vector.extract_strided_slice %0 {offsets = [0, 4], sizes = [72, 1], strides = [1, 1]} : vector<72x5xf32> to vector<72x1xf32>
    %26 = vector.extract_strided_slice %1 {offsets = [4, 0], sizes = [1, 16], strides = [1, 1]} : vector<5x16xf32> to vector<1x16xf32>
    %27 = vector.broadcast %25 : vector<72x1xf32> to vector<72x16xf32>
    %28 = vector.broadcast %26 : vector<1x16xf32> to vector<72x16xf32>
    %29 = arith.mulf %27, %28 : vector<72x16xf32>
    %30 = arith.addf %24, %29 : vector<72x16xf32>
    %cst = arith.constant 2.000000e-01 : f32
    %31 = vector.broadcast %cst : f32 to vector<72x16xf32>
    %32 = arith.mulf %31, %30 : vector<72x16xf32>
    %33 = arith.maximumf %30, %32 : vector<72x16xf32>
    %c0_3 = arith.constant 0 : index
    %c0_4 = arith.constant 0 : index
    %34 = vector.load %arg13[%c0_3, %c0_4] : memref<72x16xf32, #tpu.memory_space<vmem>>, vector<72x16xf32>
    tpu.vector_store %arg13[%c0_3, %c0_4], %33 {strides = array<i32>} : memref<72x16xf32, #tpu.memory_space<vmem>>, vector<72x16xf32>,
    %c0_5 = arith.constant 0 : index
    %c0_6 = arith.constant 0 : index
    %35 = vector.load %arg13[%c0_5, %c0_6] : memref<72x16xf32, #tpu.memory_space<vmem>>, vector<4x16xf32>
    %c8 = arith.constant 8 : index
    %c0_7 = arith.constant 0 : index
    %36 = vector.load %arg13[%c8, %c0_7] : memref<72x16xf32, #tpu.memory_space<vmem>>, vector<4x16xf32>
    %c16 = arith.constant 16 : index
    %c0_8 = arith.constant 0 : index
    %37 = vector.load %arg13[%c16, %c0_8] : memref<72x16xf32, #tpu.memory_space<vmem>>, vector<4x16xf32>
    %c24 = arith.constant 24 : index
    %c0_9 = arith.constant 0 : index
    %38 = vector.load %arg13[%c24, %c0_9] : memref<72x16xf32, #tpu.memory_space<vmem>>, vector<4x16xf32>
    %c32 = arith.constant 32 : index
    %c0_10 = arith.constant 0 : index
    %39 = vector.load %arg13[%c32, %c0_10] : memref<72x16xf32, #tpu.memory_space<vmem>>, vector<4x16xf32>
    %c40 = arith.constant 40 : index
    %c0_11 = arith.constant 0 : index
    %40 = vector.load %arg13[%c40, %c0_11] : memref<72x16xf32, #tpu.memory_space<vmem>>, vector<4x16xf32>
    %c48 = arith.constant 48 : index
    %c0_12 = arith.constant 0 : index
    %41 = vector.load %arg13[%c48, %c0_12] : memref<72x16xf32, #tpu.memory_space<vmem>>, vector<4x16xf32>
    %c56 = arith.constant 56 : index
    %c0_13 = arith.constant 0 : index
    %42 = vector.load %arg13[%c56, %c0_13] : memref<72x16xf32, #tpu.memory_space<vmem>>, vector<4x16xf32>
    %43 = tpu.concatenate %35, %36, %37, %38, %39, %40, %41, %42 in 0 : vector<4x16xf32>, vector<4x16xf32>, vector<4x16xf32>, vector<4x16xf32>, vector<4x16xf32>, vector<4x16xf32>, vector<4x16xf32>, vector<4x16xf32> -> vector<32x16xf32>
    %c4 = arith.constant 4 : index
    %c0_14 = arith.constant 0 : index
    %44 = vector.load %arg13[%c4, %c0_14] : memref<72x16xf32, #tpu.memory_space<vmem>>, vector<4x16xf32>
    %c12 = arith.constant 12 : index
    %c0_15 = arith.constant 0 : index
    %45 = vector.load %arg13[%c12, %c0_15] : memref<72x16xf32, #tpu.memory_space<vmem>>, vector<4x16xf32>
    %c20 = arith.constant 20 : index
    %c0_16 = arith.constant 0 : index
    %46 = vector.load %arg13[%c20, %c0_16] : memref<72x16xf32, #tpu.memory_space<vmem>>, vector<4x16xf32>
    %c28 = arith.constant 28 : index
    %c0_17 = arith.constant 0 : index
    %47 = vector.load %arg13[%c28, %c0_17] : memref<72x16xf32, #tpu.memory_space<vmem>>, vector<4x16xf32>
    %c36 = arith.constant 36 : index
    %c0_18 = arith.constant 0 : index
    %48 = vector.load %arg13[%c36, %c0_18] : memref<72x16xf32, #tpu.memory_space<vmem>>, vector<4x16xf32>
    %c44 = arith.constant 44 : index
    %c0_19 = arith.constant 0 : index
    %49 = vector.load %arg13[%c44, %c0_19] : memref<72x16xf32, #tpu.memory_space<vmem>>, vector<4x16xf32>
    %c52 = arith.constant 52 : index
    %c0_20 = arith.constant 0 : index
    %50 = vector.load %arg13[%c52, %c0_20] : memref<72x16xf32, #tpu.memory_space<vmem>>, vector<4x16xf32>
    %c60 = arith.constant 60 : index
    %c0_21 = arith.constant 0 : index
    %51 = vector.load %arg13[%c60, %c0_21] : memref<72x16xf32, #tpu.memory_space<vmem>>, vector<4x16xf32>
    %52 = tpu.concatenate %44, %45, %46, %47, %48, %49, %50, %51 in 0 : vector<4x16xf32>, vector<4x16xf32>, vector<4x16xf32>, vector<4x16xf32>, vector<4x16xf32>, vector<4x16xf32>, vector<4x16xf32>, vector<4x16xf32> -> vector<32x16xf32>
    %c8_22 = arith.constant 8 : index
    %c0_23 = arith.constant 0 : index
    %53 = vector.load %arg13[%c8_22, %c0_23] : memref<72x16xf32, #tpu.memory_space<vmem>>, vector<4x16xf32>
    %c16_24 = arith.constant 16 : index
    %c0_25 = arith.constant 0 : index
    %54 = vector.load %arg13[%c16_24, %c0_25] : memref<72x16xf32, #tpu.memory_space<vmem>>, vector<4x16xf32>
    %c24_26 = arith.constant 24 : index
    %c0_27 = arith.constant 0 : index
    %55 = vector.load %arg13[%c24_26, %c0_27] : memref<72x16xf32, #tpu.memory_space<vmem>>, vector<4x16xf32>
    %c32_28 = arith.constant 32 : index
    %c0_29 = arith.constant 0 : index
    %56 = vector.load %arg13[%c32_28, %c0_29] : memref<72x16xf32, #tpu.memory_space<vmem>>, vector<4x16xf32>
    %c40_30 = arith.constant 40 : index
    %c0_31 = arith.constant 0 : index
    %57 = vector.load %arg13[%c40_30, %c0_31] : memref<72x16xf32, #tpu.memory_space<vmem>>, vector<4x16xf32>
    %c48_32 = arith.constant 48 : index
    %c0_33 = arith.constant 0 : index
    %58 = vector.load %arg13[%c48_32, %c0_33] : memref<72x16xf32, #tpu.memory_space<vmem>>, vector<4x16xf32>
    %c56_34 = arith.constant 56 : index
    %c0_35 = arith.constant 0 : index
    %59 = vector.load %arg13[%c56_34, %c0_35] : memref<72x16xf32, #tpu.memory_space<vmem>>, vector<4x16xf32>
    %c64 = arith.constant 64 : index
    %c0_36 = arith.constant 0 : index
    %60 = vector.load %arg13[%c64, %c0_36] : memref<72x16xf32, #tpu.memory_space<vmem>>, vector<4x16xf32>
    %61 = tpu.concatenate %53, %54, %55, %56, %57, %58, %59, %60 in 0 : vector<4x16xf32>, vector<4x16xf32>, vector<4x16xf32>, vector<4x16xf32>, vector<4x16xf32>, vector<4x16xf32>, vector<4x16xf32>, vector<4x16xf32> -> vector<32x16xf32>
    %62 = tpu.concatenate %43, %52, %61 in 1 : vector<32x16xf32>, vector<32x16xf32>, vector<32x16xf32> -> vector<32x48xf32>
    %c0_37 = arith.constant 0 : index
    %c0_38 = arith.constant 0 : index
    %63 = vector.load %arg2[%c0_37, %c0_38] : memref<48x32xf32, #tpu.memory_space<vmem>>, vector<48x32xf32>
    %cst_39 = arith.constant dense<0.000000e+00> : vector<32x32xf32>
    %64 = tpu.matmul %62, %63, %cst_39 {dimension_numbers = #tpu.dot_dimension_numbers<[1], [0], [0], [1], [0, 0, 1, 1], [], []>} : vector<32x48xf32>, vector<48x32xf32>, vector<32x32xf32> -> vector<32x32xf32>
    %cst_40 = arith.constant dense<0.000000e+00> : vector<32xf32>
    %65 = vector.multi_reduction <add>, %64, %cst_40 [0] : vector<32x32xf32> to vector<32xf32>
    %66 = vector.shape_cast %65 : vector<32xf32> to vector<1x32xf32>
    %cst_41 = arith.constant 3.200000e+01 : f32
    %67 = vector.broadcast %cst_41 : f32 to vector<1x32xf32>
    %68 = arith.divf %66, %67 : vector<1x32xf32>
    %69 = arith.mulf %64, %64 : vector<32x32xf32>
    %cst_42 = arith.constant dense<0.000000e+00> : vector<32xf32>
    %70 = vector.multi_reduction <add>, %69, %cst_42 [0] : vector<32x32xf32> to vector<32xf32>
    %71 = vector.shape_cast %70 : vector<32xf32> to vector<1x32xf32>
    %cst_43 = arith.constant 3.200000e+01 : f32
    %72 = vector.broadcast %cst_43 : f32 to vector<1x32xf32>
    %73 = arith.divf %71, %72 : vector<1x32xf32>
    %74 = arith.mulf %68, %68 : vector<1x32xf32>
    %75 = arith.subf %73, %74 : vector<1x32xf32>
    %c0_44 = arith.constant 0 : index
    %c0_45 = arith.constant 0 : index
    %76 = vector.load %arg6[%c0_44, %c0_45] : memref<1x32xf32, #tpu.memory_space<vmem>>, vector<1x32xf32>
    %cst_46 = arith.constant 9.99999974E-6 : f32
    %77 = vector.broadcast %cst_46 : f32 to vector<1x32xf32>
    %78 = arith.addf %75, %77 : vector<1x32xf32>
    %79 = math.rsqrt %78 : vector<1x32xf32>
    %80 = arith.mulf %76, %79 : vector<1x32xf32>
    %c0_47 = arith.constant 0 : index
    %c0_48 = arith.constant 0 : index
    %81 = vector.load %arg7[%c0_47, %c0_48] : memref<1x32xf32, #tpu.memory_space<vmem>>, vector<1x32xf32>
    %82 = arith.mulf %68, %80 : vector<1x32xf32>
    %83 = arith.subf %81, %82 : vector<1x32xf32>
    %84 = vector.broadcast %80 : vector<1x32xf32> to vector<32x32xf32>
    %85 = arith.mulf %64, %84 : vector<32x32xf32>
    %86 = vector.broadcast %83 : vector<1x32xf32> to vector<32x32xf32>
    %87 = arith.addf %85, %86 : vector<32x32xf32>
    %cst_49 = arith.constant 2.000000e-01 : f32
    %88 = vector.broadcast %cst_49 : f32 to vector<32x32xf32>
    %89 = arith.mulf %88, %87 : vector<32x32xf32>
    %90 = arith.maximumf %87, %89 : vector<32x32xf32>
    %c0_50 = arith.constant 0 : index
    %c0_51 = arith.constant 0 : index
    %91 = vector.load %arg14[%c0_50, %c0_51] : memref<32x32xf32, #tpu.memory_space<vmem>>, vector<32x32xf32>
    tpu.vector_store %arg14[%c0_50, %c0_51], %90 {strides = array<i32>} : memref<32x32xf32, #tpu.memory_space<vmem>>, vector<32x32xf32>,
    %c0_52 = arith.constant 0 : index
    %c0_53 = arith.constant 0 : index
    %92 = vector.load %arg14[%c0_52, %c0_53] : memref<32x32xf32, #tpu.memory_space<vmem>>, vector<4x32xf32>
    %c8_54 = arith.constant 8 : index
    %c0_55 = arith.constant 0 : index
    %93 = vector.load %arg14[%c8_54, %c0_55] : memref<32x32xf32, #tpu.memory_space<vmem>>, vector<4x32xf32>
    %c16_56 = arith.constant 16 : index
    %c0_57 = arith.constant 0 : index
    %94 = vector.load %arg14[%c16_56, %c0_57] : memref<32x32xf32, #tpu.memory_space<vmem>>, vector<4x32xf32>
    %95 = tpu.concatenate %92, %93, %94 in 0 : vector<4x32xf32>, vector<4x32xf32>, vector<4x32xf32> -> vector<12x32xf32>
    %c4_58 = arith.constant 4 : index
    %c0_59 = arith.constant 0 : index
    %96 = vector.load %arg14[%c4_58, %c0_59] : memref<32x32xf32, #tpu.memory_space<vmem>>, vector<4x32xf32>
    %c12_60 = arith.constant 12 : index
    %c0_61 = arith.constant 0 : index
    %97 = vector.load %arg14[%c12_60, %c0_61] : memref<32x32xf32, #tpu.memory_space<vmem>>, vector<4x32xf32>
    %c20_62 = arith.constant 20 : index
    %c0_63 = arith.constant 0 : index
    %98 = vector.load %arg14[%c20_62, %c0_63] : memref<32x32xf32, #tpu.memory_space<vmem>>, vector<4x32xf32>
    %99 = tpu.concatenate %96, %97, %98 in 0 : vector<4x32xf32>, vector<4x32xf32>, vector<4x32xf32> -> vector<12x32xf32>
    %c8_64 = arith.constant 8 : index
    %c0_65 = arith.constant 0 : index
    %100 = vector.load %arg14[%c8_64, %c0_65] : memref<32x32xf32, #tpu.memory_space<vmem>>, vector<4x32xf32>
    %c16_66 = arith.constant 16 : index
    %c0_67 = arith.constant 0 : index
    %101 = vector.load %arg14[%c16_66, %c0_67] : memref<32x32xf32, #tpu.memory_space<vmem>>, vector<4x32xf32>
    %c24_68 = arith.constant 24 : index
    %c0_69 = arith.constant 0 : index
    %102 = vector.load %arg14[%c24_68, %c0_69] : memref<32x32xf32, #tpu.memory_space<vmem>>, vector<4x32xf32>
    %103 = tpu.concatenate %100, %101, %102 in 0 : vector<4x32xf32>, vector<4x32xf32>, vector<4x32xf32> -> vector<12x32xf32>
    %104 = tpu.concatenate %95, %99, %103 in 1 : vector<12x32xf32>, vector<12x32xf32>, vector<12x32xf32> -> vector<12x96xf32>
    %c0_70 = arith.constant 0 : index
    %c0_71 = arith.constant 0 : index
    %105 = vector.load %arg3[%c0_70, %c0_71] : memref<96x64xf32, #tpu.memory_space<vmem>>, vector<96x64xf32>
    %cst_72 = arith.constant dense<0.000000e+00> : vector<12x64xf32>
    %106 = tpu.matmul %104, %105, %cst_72 {dimension_numbers = #tpu.dot_dimension_numbers<[1], [0], [0], [1], [0, 0, 1, 1], [], []>} : vector<12x96xf32>, vector<96x64xf32>, vector<12x64xf32> -> vector<12x64xf32>
    %cst_73 = arith.constant dense<0.000000e+00> : vector<64xf32>
    %107 = vector.multi_reduction <add>, %106, %cst_73 [0] : vector<12x64xf32> to vector<64xf32>
    %108 = vector.shape_cast %107 : vector<64xf32> to vector<1x64xf32>
    %cst_74 = arith.constant 1.200000e+01 : f32
    %109 = vector.broadcast %cst_74 : f32 to vector<1x64xf32>
    %110 = arith.divf %108, %109 : vector<1x64xf32>
    %111 = arith.mulf %106, %106 : vector<12x64xf32>
    %cst_75 = arith.constant dense<0.000000e+00> : vector<64xf32>
    %112 = vector.multi_reduction <add>, %111, %cst_75 [0] : vector<12x64xf32> to vector<64xf32>
    %113 = vector.shape_cast %112 : vector<64xf32> to vector<1x64xf32>
    %cst_76 = arith.constant 1.200000e+01 : f32
    %114 = vector.broadcast %cst_76 : f32 to vector<1x64xf32>
    %115 = arith.divf %113, %114 : vector<1x64xf32>
    %116 = arith.mulf %110, %110 : vector<1x64xf32>
    %117 = arith.subf %115, %116 : vector<1x64xf32>
    %c0_77 = arith.constant 0 : index
    %c0_78 = arith.constant 0 : index
    %118 = vector.load %arg8[%c0_77, %c0_78] : memref<1x64xf32, #tpu.memory_space<vmem>>, vector<1x64xf32>
    %cst_79 = arith.constant 9.99999974E-6 : f32
    %119 = vector.broadcast %cst_79 : f32 to vector<1x64xf32>
    %120 = arith.addf %117, %119 : vector<1x64xf32>
    %121 = math.rsqrt %120 : vector<1x64xf32>
    %122 = arith.mulf %118, %121 : vector<1x64xf32>
    %c0_80 = arith.constant 0 : index
    %c0_81 = arith.constant 0 : index
    %123 = vector.load %arg9[%c0_80, %c0_81] : memref<1x64xf32, #tpu.memory_space<vmem>>, vector<1x64xf32>
    %124 = arith.mulf %110, %122 : vector<1x64xf32>
    %125 = arith.subf %123, %124 : vector<1x64xf32>
    %126 = vector.broadcast %122 : vector<1x64xf32> to vector<12x64xf32>
    %127 = arith.mulf %106, %126 : vector<12x64xf32>
    %128 = vector.broadcast %125 : vector<1x64xf32> to vector<12x64xf32>
    %129 = arith.addf %127, %128 : vector<12x64xf32>
    %cst_82 = arith.constant 2.000000e-01 : f32
    %130 = vector.broadcast %cst_82 : f32 to vector<12x64xf32>
    %131 = arith.mulf %130, %129 : vector<12x64xf32>
    %132 = arith.maximumf %129, %131 : vector<12x64xf32>
    %c0_83 = arith.constant 0 : index
    %c0_84 = arith.constant 0 : index
    %133 = vector.load %arg15[%c0_83, %c0_84] : memref<12x64xf32, #tpu.memory_space<vmem>>, vector<12x64xf32>
    tpu.vector_store %arg15[%c0_83, %c0_84], %132 {strides = array<i32>} : memref<12x64xf32, #tpu.memory_space<vmem>>, vector<12x64xf32>,
    %c0_85 = arith.constant 0 : index
    %c0_86 = arith.constant 0 : index
    %134 = vector.load %arg15[%c0_85, %c0_86] : memref<12x64xf32, #tpu.memory_space<vmem>>, vector<4x64xf32>
    %c8_87 = arith.constant 8 : index
    %c0_88 = arith.constant 0 : index
    %135 = vector.load %arg15[%c8_87, %c0_88] : memref<12x64xf32, #tpu.memory_space<vmem>>, vector<4x64xf32>
    %136 = tpu.concatenate %134, %135 in 0 : vector<4x64xf32>, vector<4x64xf32> -> vector<8x64xf32>
    %c0_89 = arith.constant 0 : index
    %c0_90 = arith.constant 0 : index
    %137 = vector.load %arg4[%c0_89, %c0_90] : memref<64x128xf32, #tpu.memory_space<vmem>>, vector<64x128xf32>
    %cst_91 = arith.constant dense<0.000000e+00> : vector<8x128xf32>
    %138 = tpu.matmul %136, %137, %cst_91 {dimension_numbers = #tpu.dot_dimension_numbers<[1], [0], [0], [1], [0, 0, 1, 1], [], []>} : vector<8x64xf32>, vector<64x128xf32>, vector<8x128xf32> -> vector<8x128xf32>
    %cst_92 = arith.constant dense<0.000000e+00> : vector<128xf32>
    %139 = vector.multi_reduction <add>, %138, %cst_92 [0] : vector<8x128xf32> to vector<128xf32>
    %140 = vector.shape_cast %139 : vector<128xf32> to vector<1x128xf32>
    %cst_93 = arith.constant 8.000000e+00 : f32
    %141 = vector.broadcast %cst_93 : f32 to vector<1x128xf32>
    %142 = arith.divf %140, %141 : vector<1x128xf32>
    %143 = arith.mulf %138, %138 : vector<8x128xf32>
    %cst_94 = arith.constant dense<0.000000e+00> : vector<128xf32>
    %144 = vector.multi_reduction <add>, %143, %cst_94 [0] : vector<8x128xf32> to vector<128xf32>
    %145 = vector.shape_cast %144 : vector<128xf32> to vector<1x128xf32>
    %cst_95 = arith.constant 8.000000e+00 : f32
    %146 = vector.broadcast %cst_95 : f32 to vector<1x128xf32>
    %147 = arith.divf %145, %146 : vector<1x128xf32>
    %148 = arith.mulf %142, %142 : vector<1x128xf32>
    %149 = arith.subf %147, %148 : vector<1x128xf32>
    %c0_96 = arith.constant 0 : index
    %c0_97 = arith.constant 0 : index
    %150 = vector.load %arg10[%c0_96, %c0_97] : memref<1x128xf32, #tpu.memory_space<vmem>>, vector<1x128xf32>
    %cst_98 = arith.constant 9.99999974E-6 : f32
    %151 = vector.broadcast %cst_98 : f32 to vector<1x128xf32>
    %152 = arith.addf %149, %151 : vector<1x128xf32>
    %153 = math.rsqrt %152 : vector<1x128xf32>
    %154 = arith.mulf %150, %153 : vector<1x128xf32>
    %c0_99 = arith.constant 0 : index
    %c0_100 = arith.constant 0 : index
    %155 = vector.load %arg11[%c0_99, %c0_100] : memref<1x128xf32, #tpu.memory_space<vmem>>, vector<1x128xf32>
    %156 = arith.mulf %142, %154 : vector<1x128xf32>
    %157 = arith.subf %155, %156 : vector<1x128xf32>
    %158 = vector.broadcast %154 : vector<1x128xf32> to vector<8x128xf32>
    %159 = arith.mulf %138, %158 : vector<8x128xf32>
    %160 = vector.broadcast %157 : vector<1x128xf32> to vector<8x128xf32>
    %161 = arith.addf %159, %160 : vector<8x128xf32>
    %cst_101 = arith.constant 2.000000e-01 : f32
    %162 = vector.broadcast %cst_101 : f32 to vector<8x128xf32>
    %163 = arith.mulf %162, %161 : vector<8x128xf32>
    %164 = arith.maximumf %161, %163 : vector<8x128xf32>
    %c0_102 = arith.constant 0 : index
    %c0_103 = arith.constant 0 : index
    %165 = vector.load %arg16[%c0_102, %c0_103] : memref<8x128xf32, #tpu.memory_space<vmem>>, vector<8x128xf32>
    tpu.vector_store %arg16[%c0_102, %c0_103], %164 {strides = array<i32>} : memref<8x128xf32, #tpu.memory_space<vmem>>, vector<8x128xf32>,
    %c0_104 = arith.constant 0 : index
    %c0_105 = arith.constant 0 : index
    %166 = vector.load %arg5[%c0_104, %c0_105] : memref<1x128xf32, #tpu.memory_space<vmem>>, vector<1x128xf32>
    %c0_106 = arith.constant 0 : index
    %c0_107 = arith.constant 0 : index
    %167 = vector.load %arg16[%c0_106, %c0_107] : memref<8x128xf32, #tpu.memory_space<vmem>>, vector<4x128xf32>
    %168 = vector.broadcast %166 : vector<1x128xf32> to vector<4x128xf32>
    %169 = arith.mulf %167, %168 : vector<4x128xf32>
    %cst_108 = arith.constant dense<0.000000e+00> : vector<4xf32>
    %170 = vector.multi_reduction <add>, %169, %cst_108 [1] : vector<4x128xf32> to vector<4xf32>
    %171 = vector.shape_cast %170 : vector<4xf32> to vector<4x1xf32>
    %cst_109 = arith.constant 0.000000e+00 : f32
    %172 = vector.broadcast %cst_109 : f32 to vector<4x1xf32>
    %173 = arith.subf %172, %171 : vector<4x1xf32>
    %174 = math.exp %173 : vector<4x1xf32>
    %cst_110 = arith.constant 1.000000e+00 : f32
    %175 = vector.broadcast %cst_110 : f32 to vector<4x1xf32>
    %176 = arith.addf %175, %174 : vector<4x1xf32>
    %cst_111 = arith.constant 1.000000e+00 : f32
    %177 = vector.broadcast %cst_111 : f32 to vector<4x1xf32>
    %178 = arith.divf %177, %176 : vector<4x1xf32>
    %c0_112 = arith.constant 0 : index
    %c0_113 = arith.constant 0 : index
    %179 = vector.load %arg12[%c0_112, %c0_113] : memref<4x1xf32, #tpu.memory_space<vmem>>, vector<4x1xf32>
    tpu.vector_store %arg12[%c0_112, %c0_113], %178 {strides = array<i32>} : memref<4x1xf32, #tpu.memory_space<vmem>>, vector<4x1xf32>,
    return
  }
}

</mosaic_0001>

<bundles_post_ra>
// kernel: discriminator_forward.1
= control target key start
LH: loop header
LB: loop body
LE: loop exit
PB: predicated region body
PF: predicated region fallthrough
CT: control target
= control target key end

     0   :  { %v936_v0 = vmov 4   ;;  %v937_v1 = vmov 0   ;;  %v938_v5 = vmov 1   ;;  %v939_v7 = vmov 2   ;;  %s942_s22 = smov 16   ;;  %s1368_s0 = inlined_call_operand.vmem [shape: f32[72,5], index: 0, kind: input, shape index: {}]   ;;  %s1369_s1 = inlined_call_operand.vmem [shape: f32[5,16], index: 1, kind: input, shape index: {}]   ;;  %s1370_s2 = inlined_call_operand.vmem [shape: f32[48,32], index: 2, kind: input, shape index: {}]   ;;  %s1371_s6 = inlined_call_operand.vmem [shape: f32[1,32], index: 6, kind: input, shape index: {}]   ;;  %s1372_s7 = inlined_call_operand.vmem [shape: f32[1,32], index: 7, kind: input, shape index: {}]   ;;  %s1373_s3 = inlined_call_operand.vmem [shape: f32[96,64], index: 3, kind: input, shape index: {}]   ;;  %s1374_s4 = inlined_call_operand.vmem [shape: f32[64,128], index: 4, kind: input, shape index: {}]   ;;  %s1375_s8 = inlined_call_operand.vmem [shape: f32[1,64], index: 8, kind: input, shape index: {}]   ;;  %s1376_s9 = inlined_call_operand.vmem [shape: f32[1,64], index: 9, kind: input, shape index: {}]   ;;  %s1377_s5 = inlined_call_operand.vmem [shape: f32[1,128], index: 5, kind: input, shape index: {}]   ;;  %s1378_s10 = inlined_call_operand.vmem [shape: f32[1,128], index: 10, kind: input, shape index: {}]   ;;  %s1379_s11 = inlined_call_operand.vmem [shape: f32[1,128], index: 11, kind: input, shape index: {}]   ;;  %s1380_s12 = inlined_call_operand.vmem [shape: f32[4,1], index: 12, kind: output, shape index: {}]  }
   0x1   :  { %893 = vset.pattern.permute.xlu0 %v936_v0  ;;  %886 = vset.pattern.permute.xlu2 %v937_v1  ;;  %v45_v2 = vld [vmem:[%s1368_s0 + $0x20] sm:$0xff]  ;;  %v43_v3 = vld [vmem:[%s1368_s0 + $0x10] sm:$0xff]  ;;  %v46_v4 = vld [vmem:[%s1368_s0 + $0x28] sm:$0xff]  ;;  %v940_v9 = vmov 3   ;;  %vm344_vm0 = vcmask 130048   ;;  %vm374_vm1 = vcmask 1043456  }
   0x2   :  { %884 = vset.pattern.permute.xlu1 %v937_v1  ;;  %288 = vperm.xlu0 %893, %v45_v2   ;;  %v44_v6 = vld [vmem:[%s1368_s0 + $0x18] sm:$0xff]  ;;  %v47_v8 = vld [vmem:[%s1368_s0 + $0x30] sm:$0xff]  ;;  %v1038_v10 = vld [vmem:[%s1368_s0 + $0x40] sm:$0xff]  ;;  %vm456_vm2 = vcmask 261120   ;;  %vm467_vm3 = vcmask 392192   ;;  %vm644_vm8 = vcmask 785408  }
   0x3   :  { %73 = vperm.xlu1 %884, %v45_v2   ;;  %63 = vperm.xlu2 %886, %v43_v3   ;;  %v1048_v11 = vld [vmem:[%s1368_s0] sm:$0xff]  ;;  %v42_v12 = vld [vmem:[%s1368_s0 + $0x8] sm:$0xff]  ;;  %v48_v13 = vld [vmem:[%s1368_s0 + $0x38] sm:$0xff]  ;;  %vm629_vm9 = vcmask 523264   ;;  %vm675_vm10 = vcmask 519168  }
   0x4   :  { %v50_v19 = vld [vmem:[%s1369_s1] sm:$0x1f]  ;;  %s941_s1 = smov 32  }
   0x5   :  { %v1079_v20 = vperm.slane %v50_v19, 0  ;;  %v1081_v21 = vperm.slane %v50_v19, 2  ;;  %v1085_v24 = vperm.slane %v50_v19, 1  ;;  %v1087_v25 = vperm.slane %v50_v19, 3 }
   0x6   :  { %v1091_v28 = vperm.slane %v50_v19, 4 }
   0xa   :  { %292 = vperm.xlu0 %893, %v46_v4  }
   0xb   :  { %885 = vset.pattern.permute.xlu1 %v938_v5  ;;  %887 = vset.pattern.permute.xlu2 %v938_v5 }
   0xc   :  { %123 = vperm.xlu1 %885, %v45_v2   ;;  %115 = vperm.xlu2 %887, %v43_v3  }
  0x12   :  { %902 = vset.pattern.permute.xlu0 %v938_v5 }
  0x13   :  { %119 = vperm.xlu0 %902, %v44_v6  }
  0x14   :  { %888 = vset.pattern.permute.xlu1 %v939_v7  ;;  %889 = vset.pattern.permute.xlu2 %v939_v7 }
  0x15   :  { %174 = vperm.xlu1 %888, %v44_v6   ;;  %178 = vperm.xlu2 %889, %v45_v2  }
  0x1b   :  { %131 = vperm.xlu0 %902, %v47_v8  }
  0x1d   :  { %890 = vset.pattern.permute.xlu1 %v940_v9  ;;  %891 = vset.pattern.permute.xlu2 %v940_v9 }
  0x1e   :  { %229 = vperm.xlu1 %890, %v44_v6   ;;  %233 = vperm.xlu2 %891, %v45_v2  }
  0x23   :  { %139 = vperm.xlu0 %902, %v1038_v10  }
  0x26   :  { %225 = vperm.xlu1 %890, %v43_v3   ;;  %892 = vset.pattern.permute.xlu2 %v936_v0 }
  0x27   :  { %284 = vperm.xlu2 %892, %v44_v6  }
  0x2b   :  { %906 = vset.pattern.permute.xlu0 %v937_v1 }
  0x2c   :  { %68 = vperm.xlu0 %906, %v44_v6  }
  0x2e   :  { %894 = vset.pattern.permute.xlu1 %v937_v1 }
  0x2f   :  { %78 = vperm.xlu1 %894, %v46_v4   ;;  %895 = vset.pattern.permute.xlu2 %v938_v5 }
  0x30   :  { %127 = vperm.xlu2 %895, %v46_v4  }
  0x34   :  { %53 = vperm.xlu0 %906, %v1048_v11  }
  0x37   :  { %896 = vset.pattern.permute.xlu1 %v936_v0 }
  0x38   :  { %280 = vperm.xlu1 %896, %v43_v3   ;;  %897 = vset.pattern.permute.xlu2 %v937_v1 }
  0x39   :  { %83 = vperm.xlu2 %897, %v47_v8  }
  0x3c   :  { %911 = vset.pattern.permute.xlu0 %v939_v7 }
  0x3d   :  { %170 = vperm.xlu0 %911, %v43_v3  }
  0x40   :  { %898 = vset.pattern.permute.xlu1 %v939_v7 }
  0x41   :  { %182 = vperm.xlu1 %898, %v46_v4   ;;  %899 = vset.pattern.permute.xlu2 %v939_v7 }
  0x42   :  { %186 = vperm.xlu2 %899, %v47_v8  }
  0x45   :  { %162 = vperm.xlu0 %911, %v1048_v11  }
  0x49   :  { %900 = vset.pattern.permute.xlu1 %v940_v9 }
  0x4a   :  { %237 = vperm.xlu1 %900, %v46_v4   ;;  %901 = vset.pattern.permute.xlu2 %v940_v9 }
  0x4b   :  { %241 = vperm.xlu2 %901, %v47_v8  }
  0x4d   :  { %918 = vset.pattern.permute.xlu0 %v936_v0 }
  0x4e   :  { %276 = vperm.xlu0 %918, %v42_v12  }
  0x52   :  { %903 = vset.pattern.permute.xlu1 %v936_v0 }
  0x53   :  { %296 = vperm.xlu1 %903, %v47_v8   ;;  %904 = vset.pattern.permute.xlu2 %v937_v1 }
  0x54   :  { %88 = vperm.xlu2 %904, %v48_v13  }
  0x5b   :  { %905 = vset.pattern.permute.xlu1 %v938_v5 }
  0x5c   :  { %135 = vperm.xlu1 %905, %v48_v13   ;;  %93 = vperm.xlu2 %904, %v1038_v10  }
  0x5d   :  { %v1067_v14 = vpop.permute.xlu2 %63 }
  0x64   :  { %907 = vset.pattern.permute.xlu1 %v937_v1  ;;  %908 = vset.pattern.permute.xlu2 %v938_v5 }
  0x65   :  { %111 = vperm.xlu2 %908, %v42_v12   ;;  %58 = vperm.xlu1 %907, %v42_v12  }
  0x66   :  { %v1071_v15 = vpop.permute.xlu2 %115 }
  0x67   :  { %v145_v1 = vmul.f32 %v1085_v24, %v1071_v15 }
  0x6d   :  { %910 = vset.pattern.permute.xlu2 %v939_v7  ;;  %909 = vset.pattern.permute.xlu1 %v939_v7 }
  0x6e   :  { %194 = vperm.xlu2 %910, %v1038_v10   ;;  %190 = vperm.xlu1 %909, %v48_v13  }
  0x6f   :  { %v179_v16 = vpop.permute.xlu2 %178 }
  0x70   :  { %v202_v29 = vmul.f32 %v1081_v21, %v179_v16 }
  0x74   :  { %v289_v17 = vpop.permute.xlu0 %288 }
  0x75   :  { %v74_v18 = vpop.permute.xlu1 %73  ;;  %v312_v33 = vmul.f32 %v1091_v28, %v289_v17 }
  0x76   :  { %166 = vperm.xlu2 %910, %v42_v12   ;;  %912 = vset.pattern.permute.xlu1 %v938_v5  ;;  %v101_v27 = vmul.f32 %v1079_v20, %v74_v18 }
  0x77   :  { %107 = vperm.xlu1 %912, %v1048_v11  }
  0x78   :  { %v234_v23 = vpop.permute.xlu2 %233 }
  0x79   :  { %v257_v32 = vmul.f32 %v1087_v25, %v234_v23 }
  0x7c   :  { %v1083_v22 = vpop.permute.xlu0 %292 }
  0x7e   :  { %v124_v26 = vpop.permute.xlu1 %123  ;;  %914 = vset.pattern.permute.xlu2 %v940_v9 }
  0x7f   :  { %v147_v30 = vmul.f32 %v1085_v24, %v124_v26  ;;  %249 = vperm.xlu2 %914, %v1038_v10   ;;  %913 = vset.pattern.permute.xlu1 %v940_v9 }
  0x80   :  { %245 = vperm.xlu1 %913, %v48_v13  }
  0x81   :  { %v156_v31 = vadd.f32 %v147_v30, %v101_v27  ;;  %v285_v37 = vpop.permute.xlu2 %284 }
  0x82   :  { %v311_v57 = vmul.f32 %v1091_v28, %v285_v37 }
  0x83   :  { %v211_v34 = vadd.f32 %v202_v29, %v156_v31 }
  0x85   :  { %v266_v35 = vadd.f32 %v257_v32, %v211_v34  ;;  %v120_v36 = vpop.permute.xlu0 %119  ;;  %v313_v32 = vmul.f32 %v1091_v28, %v1083_v22 }
  0x86   :  { %v146_v48 = vmul.f32 %v1085_v24, %v120_v36 }
  0x87   :  { %v321_v38 = vadd.f32 %v312_v33, %v266_v35  ;;  %v175_v39 = vpop.permute.xlu1 %174  ;;  %915 = vset.pattern.permute.xlu2 %v936_v0 }
  0x88   :  { %221 = vperm.xlu1 %913, %v42_v12   ;;  %300 = vperm.xlu2 %915, %v48_v13   ;;  %v201_v51 = vmul.f32 %v1081_v21, %v175_v39 }
  0x89   :  { %v330_v40 = vmul.f32 0.2, %v321_v38 }
  0x8a   :  { %v128_v44 = vpop.permute.xlu2 %127 }
  0x8b   :  { %v339_v41 = vmax.f32 %v321_v38, %v330_v40  ;;  %v148_v16 = vmul.f32 %v1085_v24, %v128_v44 }
  0x8d   :  { %349 = vst.msk [vmem:[#allocation2 + $0x20] sm:$0xff] %vm344_vm0, %v339_v41  ;;  %v132_v42 = vpop.permute.xlu0 %131 }
  0x8e   :  { %v149_v26 = vmul.f32 %v1085_v24, %v132_v42 }
  0x90   :  { %v230_v43 = vpop.permute.xlu1 %229  ;;  %916 = vset.pattern.permute.xlu1 %v936_v0  ;;  %917 = vset.pattern.permute.xlu2 %v940_v9  ;;  %v99_v0 = vmul.f32 %v1079_v20, %v1067_v14 }
  0x91   :  { %304 = vperm.xlu1 %916, %v1038_v10   ;;  %217 = vperm.xlu2 %917, %v1048_v11   ;;  %v256_v54 = vmul.f32 %v1087_v25, %v230_v43 }
  0x92   :  { %v154_v4 = vadd.f32 %v145_v1, %v99_v0 }
  0x93   :  { %v84_v47 = vpop.permute.xlu2 %83 }
  0x94   :  { %v358_v6 = vld [vmem:[#allocation2 + $0x20] sm:$0xf]  ;;  %v103_v27 = vmul.f32 %v1079_v20, %v84_v47 }
  0x95   :  { %v1105_v45 = vpop.permute.xlu0 %139  ;;  %v408_v10 = vrot.slane %v358_v6, 4 }
  0x96   :  { %v158_v35 = vadd.f32 %v149_v26, %v103_v27 }
  0x98   :  { %v226_v46 = vpop.permute.xlu1 %225 }
  0x99   :  { %272 = vperm.xlu1 %916, %v1048_v11   ;;  %v255_v7 = vmul.f32 %v1087_v25, %v226_v46 }
  0x9c   :  { %v187_v56 = vpop.permute.xlu2 %186 }
  0x9d   :  { %v204_v36 = vmul.f32 %v1081_v21, %v187_v56 }
  0x9e   :  { %v69_v49 = vpop.permute.xlu0 %68 }
  0x9f   :  { %v100_v50 = vmul.f32 %v1079_v20, %v69_v49  ;;  %v213_v40 = vadd.f32 %v204_v36, %v158_v35 }
  0xa1   :  { %v155_v52 = vadd.f32 %v146_v48, %v100_v50  ;;  %v79_v53 = vpop.permute.xlu1 %78 }
  0xa2   :  { %v102_v17 = vmul.f32 %v1079_v20, %v79_v53 }
  0xa3   :  { %v210_v55 = vadd.f32 %v201_v51, %v155_v52 }
  0xa4   :  { %v157_v30 = vadd.f32 %v148_v16, %v102_v17 }
  0xa5   :  { %v265_v58 = vadd.f32 %v256_v54, %v210_v55  ;;  %v242_v2 = vpop.permute.xlu2 %241 }
  0xa6   :  { %v1113_v59 = vpop.permute.xlu0 %53  ;;  %v259_v41 = vmul.f32 %v1087_v25, %v242_v2 }
  0xa7   :  { %v320_v60 = vadd.f32 %v311_v57, %v265_v58 }
  0xa8   :  { %v268_v49 = vadd.f32 %v259_v41, %v213_v40 }
  0xa9   :  { %v329_v61 = vmul.f32 0.2, %v320_v60 }
  0xaa   :  { %v281_v62 = vpop.permute.xlu1 %280 }
  0xab   :  { %v338_v63 = vmax.f32 %v320_v60, %v329_v61  ;;  %v310_v11 = vmul.f32 %v1091_v28, %v281_v62  ;;  %v383_v61 = vld [vmem:[#allocation2 + $0x24] sm:$0xf] }
  0xad   :  { %348 = vst.msk [vmem:[#allocation2 + $0x18] sm:$0xff] %vm344_vm0, %v338_v63 }
  0xae   :  { %v89_v19 = vpop.permute.xlu2 %88 }
  0xaf   :  { %v171_v3 = vpop.permute.xlu0 %170 }
  0xb0   :  { %v200_v5 = vmul.f32 %v1081_v21, %v171_v3 }
  0xb2   :  { %v209_v8 = vadd.f32 %v200_v5, %v154_v4 }
  0xb3   :  { %v183_v9 = vpop.permute.xlu1 %182 }
  0xb4   :  { %v264_v12 = vadd.f32 %v255_v7, %v209_v8  ;;  %v1123_v13 = vld [vmem:[#allocation2 + $0x18] sm:$0xf]  ;;  %v203_v23 = vmul.f32 %v1081_v21, %v183_v9  ;;  %v382_v38 = vld [vmem:[#allocation2 + $0x1c] sm:$0xf] }
  0xb5   :  { %v417_v14 = vsel %vm374_vm1, %v1123_v13, %v408_v10  ;;  %v391_v43 = vrot.slane %v382_v38, 4 }
  0xb6   :  { %v319_v15 = vadd.f32 %v310_v11, %v264_v12  ;;  %442 = vrot.lane.b32.xlu1 %v417_v14, %s941_s1  ;;  %v212_v33 = vadd.f32 %v203_v23, %v157_v30  ;;  %v94_v42 = vpop.permute.xlu2 %93 }
  0xb7   :  { %v163_v12 = vpop.permute.xlu0 %162  ;;  %v105_v35 = vmul.f32 %v1079_v20, %v94_v42 }
  0xb8   :  { %v328_v18 = vmul.f32 0.2, %v319_v15 }
  0xba   :  { %v337_v29 = vmax.f32 %v319_v15, %v328_v18 }
  0xbc   :  { %347 = vst.msk [vmem:[#allocation2 + $0x10] sm:$0xff] %vm344_vm0, %v337_v29  ;;  %v238_v31 = vpop.permute.xlu1 %237 }
  0xbd   :  { %v258_v34 = vmul.f32 %v1087_v25, %v238_v31 }
  0xbf   :  { %v267_v37 = vadd.f32 %v258_v34, %v212_v33  ;;  %v112_v53 = vpop.permute.xlu2 %111  ;;  %v151_v34 = vmul.f32 %v1085_v24, %v1105_v45 }
  0xc0   :  { %v144_v15 = vmul.f32 %v1085_v24, %v112_v53 }
  0xc1   :  { %v322_v39 = vadd.f32 %v313_v32, %v267_v37  ;;  %v277_v32 = vpop.permute.xlu0 %276 }
  0xc2   :  { %v309_v40 = vmul.f32 %v1091_v28, %v277_v32 }
  0xc3   :  { %v331_v44 = vmul.f32 0.2, %v322_v39  ;;  %v381_v46 = vld [vmem:[#allocation2 + $0x14] sm:$0xf] }
  0xc4   :  { %v400_v47 = vsel %vm374_vm1, %v381_v46, %v391_v43  ;;  %v466_v43 = vld [vmem:[%s1370_s2 + $0x28] sm:$0xff] }
  0xc5   :  { %v340_v48 = vmax.f32 %v322_v39, %v331_v44  ;;  %v297_v22 = vpop.permute.xlu1 %296  ;;  %426 = vrot.lane.b32.xlu2 %v400_v47, %s942_s22  ;;  %v160_v44 = vadd.f32 %v151_v34, %v105_v35  ;;  %867 = vmatpush.msra.mxu3 %v466_v43 }
  0xc6   :  { %v314_v50 = vmul.f32 %v1091_v28, %v297_v22  ;;  %490 = vmatpush.msra.mxu0 %v466_v43  ;;  %v464_v22 = vld [vmem:[%s1370_s2 + $0x18] sm:$0xff] }
  0xc7   :  { %350 = vst.msk [vmem:[#allocation2 + $0x28] sm:$0xff] %vm344_vm0, %v340_v48  ;;  %v465_v48 = vld [vmem:[%s1370_s2 + $0x20] sm:$0xff] }
  0xc8   :  { %v323_v51 = vadd.f32 %v314_v50, %v268_v49  ;;  %v195_v1 = vpop.permute.xlu2 %194  ;;  %868 = vmatpush.msra.mxu3 %v465_v48  ;;  %491 = vmatpush.msra.mxu0 %v465_v48  ;;  %v97_v50 = vmul.f32 %v1079_v20, %v1113_v59 }
  0xc9   :  { %v206_v46 = vmul.f32 %v1081_v21, %v195_v1 }
  0xca   :  { %v332_v52 = vmul.f32 0.2, %v323_v51  ;;  %869 = vmatpush.msra.mxu3 %v464_v22  ;;  %492 = vmatpush.msra.mxu0 %v464_v22 }
  0xcc   :  { %v341_v54 = vmax.f32 %v323_v51, %v332_v52  ;;  %v215_v51 = vadd.f32 %v206_v46, %v160_v44  ;;  %v463_v52 = vld [vmem:[%s1370_s2 + $0x10] sm:$0xff] }
  0xcd   :  { %870 = vmatpush.msra.mxu3 %v463_v52  ;;  %493 = vmatpush.msra.mxu0 %v463_v52 }
  0xce   :  { %351 = vst.msk [vmem:[#allocation2 + $0x30] sm:$0xff] %vm344_vm0, %v341_v54  ;;  %v136_v55 = vpop.permute.xlu1 %135  ;;  %v384_v56 = vld [vmem:[#allocation2 + $0x2c] sm:$0xf]  ;;  %v359_v57 = vld [vmem:[#allocation2 + $0x28] sm:$0xf] }
  0xcf   :  { %v394_v58 = vrot.slane %v384_v56, 4  ;;  %v369_v60 = vrot.slane %v359_v57, 4  ;;  %v150_v10 = vmul.f32 %v1085_v24, %v136_v55  ;;  %v198_v56 = vmul.f32 %v1081_v21, %v163_v12 }
  0xd0   :  { %v167_v5 = vpop.permute.xlu2 %166 }
  0xd1   :  { %v401_v62 = vsel %vm374_vm1, %v383_v61, %v394_v58  ;;  %v1146_v63 = vsel %vm374_vm1, %v358_v6, %v369_v60  ;;  %v104_v6 = vmul.f32 %v1079_v20, %v89_v19  ;;  %v199_v30 = vmul.f32 %v1081_v21, %v167_v5 }
  0xd2   :  { %428 = vrot.lane.b32.xlu2 %v401_v62, %s942_s22 }
  0xd3   :  { %v159_v14 = vadd.f32 %v150_v10, %v104_v6  ;;  %v356_v10 = vld [vmem:[#allocation2 + $0x10] sm:$0xf] }
  0xd5   :  { %v1149_v0 = vld [vmem:[#allocation2 + $0x30] sm:$0xf] }
  0xd6   :  { %v411_v2 = vrot.slane %v1149_v0, 4 }
  0xd7   :  { %v59_v3 = vpop.permute.xlu1 %58 }
  0xd8   :  { %v418_v4 = vsel %vm374_vm1, %v359_v57, %v411_v2  ;;  %v98_v18 = vmul.f32 %v1079_v20, %v59_v3  ;;  %v462_v20 = vld [vmem:[%s1370_s2 + $0x8] sm:$0xff]  ;;  %v385_v2 = vld [vmem:[#allocation2 + $0x34] sm:$0xf] }
  0xd9   :  { %444 = vrot.lane.b32.xlu0 %v418_v4, %s941_s1  ;;  %v250_v9 = vpop.permute.xlu2 %249  ;;  %871 = vmatpush.msra.mxu3 %v462_v20 }
  0xda   :  { %v153_v31 = vadd.f32 %v144_v15, %v98_v18  ;;  %v261_v42 = vmul.f32 %v1087_v25, %v250_v9  ;;  %494 = vmatpush.msra.mxu0 %v462_v20 }
  0xdc   :  { %v208_v38 = vadd.f32 %v199_v30, %v153_v31  ;;  %v270_v54 = vadd.f32 %v261_v42, %v215_v51  ;;  %v366_v31 = vrot.slane %v1123_v13, 4 }
  0xde   :  { %v376_v32 = vsel %vm374_vm1, %v356_v10, %v366_v31 }
  0xe0   :  { %v191_v7 = vpop.permute.xlu1 %190 }
  0xe1   :  { %v205_v11 = vmul.f32 %v1081_v21, %v191_v7 }
  0xe2   :  { %v301_v16 = vpop.permute.xlu2 %300 }
  0xe3   :  { %v214_v23 = vadd.f32 %v205_v11, %v159_v14  ;;  %v315_v26 = vmul.f32 %v1091_v28, %v301_v16  ;;  %v405_v14 = vrot.slane %v356_v10, 4 }
  0xe9   :  { %v108_v8 = vpop.permute.xlu1 %107 }
  0xea   :  { %v143_v47 = vmul.f32 %v1085_v24, %v108_v8  ;;  %v461_v8 = vld [vmem:[%s1370_s2] sm:$0xff] }
  0xeb   :  { %v218_v59 = vpop.permute.xlu2 %217  ;;  %872 = vmatpush.msra.mxu3 %v461_v8  ;;  %495 = vmatpush.msra.mxu0 %v461_v8 }
  0xec   :  { %v152_v55 = vadd.f32 %v143_v47, %v97_v50  ;;  %v253_v5 = vmul.f32 %v1087_v25, %v218_v59  ;;  %v943_v50 = vmov 32.0  }
  0xed   :  { %920 = vrcp.f32 %v943_v50 }
  0xee   :  { %v207_v4 = vadd.f32 %v198_v56, %v152_v55 }
  0xf0   :  { %v262_v11 = vadd.f32 %v253_v5, %v207_v4 }
  0xf2   :  { %v246_v17 = vpop.permute.xlu1 %245 }
  0xf3   :  { %v260_v27 = vmul.f32 %v1087_v25, %v246_v17  ;;  %v921_v51 = vpop.eup %920 }
  0xf4   :  { %vm527_vm4 = vweird.f32 %v921_v51 }
  0xf5   :  { %v269_v29 = vadd.f32 %v260_v27, %v214_v23 }
  0xf7   :  { %v324_v19 = vadd.f32 %v315_v26, %v269_v29 }
  0xf9   :  { %v333_v33 = vmul.f32 0.2, %v324_v19 }
  0xfa   :  { %v222_v36 = vpop.permute.xlu1 %221 }
  0xfb   :  { %v342_v37 = vmax.f32 %v324_v19, %v333_v33  ;;  %v254_v39 = vmul.f32 %v1087_v25, %v222_v36 }
  0xfd   :  { %352 = vst.msk [vmem:[#allocation2 + $0x38] sm:$0xff] %vm344_vm0, %v342_v37  ;;  %v263_v41 = vadd.f32 %v254_v39, %v208_v38 }
  0xff   :  { %v318_v45 = vadd.f32 %v309_v40, %v263_v41 }
 0x101   :  { %v327_v49 = vmul.f32 0.2, %v318_v45 }
 0x103   :  { %v336_v24 = vmax.f32 %v318_v45, %v327_v49  ;;  %v305_v53 = vpop.permute.xlu1 %304 }
 0x104   :  { %v316_v57 = vmul.f32 %v1091_v28, %v305_v53  ;;  %v386_v58 = vld [vmem:[#allocation2 + $0x3c] sm:$0xf]  ;;  %v361_v60 = vld [vmem:[#allocation2 + $0x38] sm:$0xf] }
 0x105   :  { %346 = vst.msk [vmem:[#allocation2 + $0x8] sm:$0xff] %vm344_vm0, %v336_v24  ;;  %v397_v61 = vrot.slane %v386_v58, 4  ;;  %v372_v62 = vrot.slane %v361_v60, 4 }
 0x106   :  { %v325_v1 = vadd.f32 %v316_v57, %v270_v54  ;;  %v523_v57 = vmul.f32 32.0, %v921_v51 }
 0x107   :  { %v402_v3 = vsel %vm374_vm1, %v385_v2, %v397_v61  ;;  %v378_v21 = vsel %vm374_vm1, %v1149_v0, %v372_v62 }
 0x108   :  { %v334_v7 = vmul.f32 0.2, %v325_v1  ;;  %430 = vrot.lane.b32.xlu1 %v402_v3, %s942_s22  ;;  %v524_v4 = vsub.f32 1.0, %v523_v57 }
 0x10a   :  { %v343_v9 = vmax.f32 %v325_v1, %v334_v7 }
 0x10b   :  { %v273_v6 = vpop.permute.xlu1 %272 }
 0x10c   :  { %353 = vst.msk [vmem:[#allocation2 + $0x40] sm:$0xff] %vm344_vm0, %v343_v9  ;;  %v308_v0 = vmul.f32 %v1091_v28, %v273_v6  ;;  %v355_v12 = vld [vmem:[#allocation2 + $0x8] sm:$0xf]  ;;  %v380_v27 = vld [vmem:[#allocation2 + $0xc] sm:$0xf]  ;;  %v525_v6 = vmul.f32 %v921_v51, %v524_v4 }
 0x10d   :  { %v416_v15 = vsel %vm374_vm1, %v355_v12, %v405_v14  ;;  %v388_v29 = vrot.slane %v380_v27, 4  ;;  %v363_v46 = vrot.slane %v355_v12, 4 }
 0x10e   :  { %v317_v25 = vadd.f32 %v308_v0, %v262_v11 }
 0x110   :  { %v326_v16 = vmul.f32 0.2, %v317_v25  ;;  %440 = vrot.lane.b32.xlu1 %v416_v15, %s941_s1 }
 0x112   :  { %v335_v17 = vmax.f32 %v317_v25, %v326_v16  ;;  %v526_v25 = vadd.f32 %v921_v51, %v525_v6  ;;  %v638_v6 = vld [vmem:[%s1373_s3 + $0x30] sm:$0xff] }
 0x113   :  { %v403_v18 = vld [vmem:[#allocation2 + $0x40] sm:$0xf] }
 0x114   :  { %345 = vst.msk [vmem:[#allocation2] sm:$0xff] %vm344_vm0, %v335_v17  ;;  %v414_v23 = vrot.slane %v403_v18, 4 }
 0x116   :  { %v419_v26 = vsel %vm374_vm1, %v361_v60, %v414_v23  ;;  %v528_v23 = vsel %vm527_vm4, %v921_v51, %v526_v25  ;;  %v633_v25 = vld [vmem:[%s1373_s3 + $0x8] sm:$0xff] }
 0x117   :  { %446 = vrot.lane.b32.xlu2 %v419_v26, %s941_s1 }
 0x11b   :  { %v379_v28 = vld [vmem:[#allocation2 + $0x4] sm:$0xf]  ;;  %v354_v44 = vld [vmem:[#allocation2] sm:$0xf] }
 0x11c   :  { %v399_v30 = vsel %vm374_vm1, %v379_v28, %v388_v29  ;;  %v375_v45 = vsel %vm374_vm1, %v354_v44, %v363_v46 }
 0x11d   :  { %424 = vrot.lane.b32.xlu0 %v399_v30, %s942_s22 }
 0x11f   :  { %v427_v19 = vpop.permute.xlu2 %426 }
 0x120   :  { %v453_v33 = vsel %vm344_vm0, %v376_v32, %v427_v19 }
 0x128   :  { %v443_v34 = vpop.permute.xlu1 %442 }
 0x129   :  { %v458_v35 = vsel %vm456_vm2, %v453_v33, %v443_v34 }
 0x12a   :  { %861 = vmatmul.msk.f32.vlgmr.msra.gmra.mxu3 %vm467_vm3, %v458_v35 }
 0x12c   :  { %v429_v36 = vpop.permute.xlu2 %428 }
 0x12d   :  { %v454_v37 = vsel %vm344_vm0, %v1146_v63, %v429_v36 }
 0x14b   :  { %v445_v38 = vpop.permute.xlu0 %444 }
 0x14c   :  { %v459_v39 = vsel %vm456_vm2, %v454_v37, %v445_v38  ;;  %v550_v38 = vld [vmem:[%s1371_s6] sm:$0x1]  ;;  %s944_s6 = smov 64  }
 0x14d   :  { %862 = vmatmul.msk.f32.gmra.mxu3 %vm467_vm3, %v459_v39 }
 0x171   :  { %v447_v40 = vpop.permute.xlu2 %446 }
 0x17a   :  { %v431_v13 = vpop.permute.xlu1 %430 }
 0x17b   :  { %v455_v41 = vsel %vm344_vm0, %v378_v21, %v431_v13 }
 0x17c   :  { %v460_v43 = vsel %vm456_vm2, %v455_v41, %v447_v40  ;;  %v563_v41 = vld [vmem:[%s1372_s7] sm:$0x1] }
 0x17d   :  { %863 = vmatmul.msk.f32.gmra.mxu3 %vm467_vm3, %v460_v43 }
 0x182   :  { %v441_v47 = vpop.permute.xlu1 %440 }
 0x18f   :  { %v425_v42 = vpop.permute.xlu0 %424 }
 0x190   :  { %v452_v63 = vsel %vm344_vm0, %v375_v45, %v425_v42 }
 0x191   :  { %v457_v48 = vsel %vm456_vm2, %v452_v63, %v441_v47 }
 0x192   :  { %860 = vmatmul.msk.f32.vlgmr.msra.gmra.mxu0 %vm467_vm3, %v457_v48 }
 0x1ad   :  { %v1224_v22 = vpop.f32.mrf.mxu3 }
 0x1ae   :  { %v531_v52 = vmul.f32 %v1224_v22, %v1224_v22  ;;  %v510_v24 = vsel %vm456_vm2, %v1224_v22, 0.0 }
 0x1b0   :  { %v535_v20 = vsel %vm456_vm2, %v531_v52, 0.0 }
 0x1d0   :  { %v1226_v49 = vpop.f32.mrf.mxu3 }
 0x1d1   :  { %v532_v55 = vmul.f32 %v1226_v49, %v1226_v49  ;;  %v512_v59 = vsel %vm456_vm2, %v1226_v49, 0.0 }
 0x1d3   :  { %v537_v3 = vsel %vm456_vm2, %v532_v55, 0.0 }
 0x200   :  { %v1232_v53 = vpop.f32.mrf.mxu3 }
 0x201   :  { %v533_v61 = vmul.f32 %v1232_v53, %v1232_v53  ;;  %v514_v21 = vsel %vm456_vm2, %v1232_v53, 0.0 }
 0x203   :  { %v539_v8 = vsel %vm456_vm2, %v533_v61, 0.0 }
 0x20f   :  { %v497_v54 = vpop.f32.mrf.mxu0 }
 0x210   :  { %v509_v56 = vsel %vm456_vm2, %v497_v54, 0.0  ;;  %v530_v58 = vmul.f32 %v497_v54, %v497_v54 }
 0x211   :  { %v511_v60 = vadd.f32 %v510_v24, %v509_v56 }
 0x212   :  { %v534_v62 = vsel %vm456_vm2, %v530_v58, 0.0 }
 0x213   :  { %v513_v1 = vadd.f32 %v512_v59, %v511_v60  ;;  %v536_v2 = vadd.f32 %v535_v20, %v534_v62 }
 0x215   :  { %v515_v5 = vadd.f32 %v514_v21, %v513_v1  ;;  %v538_v7 = vadd.f32 %v537_v3, %v536_v2 }
 0x217   :  { %v516_v9 = vrot.slane %v515_v5, 4  ;;  %v540_v10 = vadd.f32 %v539_v8, %v538_v7  ;;  %v642_v7 = vld [vmem:[%s1373_s3 + $0x50] sm:$0xff]  ;;  %v641_v8 = vld [vmem:[%s1373_s3 + $0x48] sm:$0xff] }
 0x219   :  { %v517_v11 = vadd.f32 %v516_v9, %v515_v5  ;;  %v541_v0 = vrot.slane %v540_v10, 4  ;;  %v643_v5 = vld [vmem:[%s1373_s3 + $0x58] sm:$0xff]  ;;  %v640_v9 = vld [vmem:[%s1373_s3 + $0x40] sm:$0xff] }
 0x21a   :  { %655 = vmatpush.msra.mxu1 %v643_v5  ;;  %v745_v5 = vld [vmem:[%s1374_s4 + $0x8] sm:$0xff] }
 0x21b   :  { %v518_v12 = vrot.slane %v517_v11, 2  ;;  %v542_v14 = vadd.f32 %v541_v0, %v540_v10  ;;  %v639_v10 = vld [vmem:[%s1373_s3 + $0x38] sm:$0xff]  ;;  %v636_v0 = vld [vmem:[%s1373_s3 + $0x20] sm:$0xff] }
 0x21c   :  { %656 = vmatpush.msra.mxu1 %v642_v7 }
 0x21d   :  { %v519_v15 = vadd.f32 %v518_v12, %v517_v11  ;;  %v543_v16 = vrot.slane %v542_v14, 2  ;;  %v637_v11 = vld [vmem:[%s1373_s3 + $0x28] sm:$0xff]  ;;  %v635_v12 = vld [vmem:[%s1373_s3 + $0x18] sm:$0xff] }
 0x21e   :  { %657 = vmatpush.msra.mxu1 %v641_v8  ;;  %v744_v8 = vld [vmem:[%s1374_s4] sm:$0xff] }
 0x21f   :  { %v520_v17 = vrot.slane %v519_v15, 1  ;;  %v544_v18 = vadd.f32 %v543_v16, %v542_v14  ;;  %v634_v14 = vld [vmem:[%s1373_s3 + $0x10] sm:$0xff] }
 0x220   :  { %658 = vmatpush.msra.mxu1 %v640_v9 }
 0x221   :  { %v521_v26 = vadd.f32 %v520_v17, %v519_v15  ;;  %v545_v27 = vrot.slane %v544_v18, 1  ;;  %v632_v15 = vld [vmem:[%s1373_s3] sm:$0xff] }
 0x222   :  { %659 = vmatpush.msra.mxu1 %v639_v10 }
 0x223   :  { %v529_v29 = vmul.f32 %v528_v23, %v521_v26  ;;  %v546_v28 = vadd.f32 %v545_v27, %v544_v18 }
 0x224   :  { %660 = vmatpush.msra.mxu1 %v638_v6 }
 0x225   :  { %v547_v30 = vmul.f32 %v546_v28, %v528_v23  ;;  %v548_v31 = vmul.f32 %v529_v29, %v529_v29 }
 0x226   :  { %661 = vmatpush.msra.mxu1 %v637_v11  ;;  %v706_v11 = vld [vmem:[%s1375_s8] sm:$0x1] }
 0x227   :  { %v549_v19 = vsub.f32 %v547_v30, %v548_v31 }
 0x228   :  { %662 = vmatpush.msra.mxu1 %v636_v0 }
 0x229   :  { %v551_v32 = vadd.f32 1e-05, %v549_v19 }
 0x22a   :  { %663 = vmatpush.msra.mxu1 %v635_v12 }
 0x22b   :  { %922 = vrsqrt.f32 %v551_v32  ;;  %vm558_vm6 = vweird.f32 %v551_v32 }
 0x22c   :  { %664 = vmatpush.msra.mxu1 %v634_v14 }
 0x22e   :  { %665 = vmatpush.msra.mxu1 %v633_v25  ;;  %v719_v25 = vld [vmem:[%s1376_s9] sm:$0x1] }
 0x230   :  { %666 = vmatpush.msra.mxu1 %v632_v15 }
 0x231   :  { %v923_v33 = vpop.eup %922 }
 0x232   :  { %v553_v34 = vmul.f32 %v923_v33, %v551_v32  ;;  %vm559_vm5 = vweird.f32 %v923_v33  ;;  %v945_v32 = vmov 12.0  }
 0x233   :  { %vm560_vm7 = vmor %vm558_vm6, %vm559_vm5  ;;  %924 = vrcp.f32 %v945_v32  ;;  %vm854_vm6 = vcmask 3072  }
 0x234   :  { %v554_v35 = vmul.f32 %v923_v33, %v553_v34 }
 0x236   :  { %v555_v36 = vmul.f32 0.5, %v554_v35 }
 0x238   :  { %v556_v37 = vsub.f32 1.5, %v555_v36 }
 0x239   :  { %v925_v34 = vpop.eup %924 }
 0x23a   :  { %v557_v39 = vmul.f32 %v923_v33, %v556_v37  ;;  %v685_v35 = vmul.f32 12.0, %v925_v34  ;;  %vm689_vm11 = vweird.f32 %v925_v34 }
 0x23c   :  { %v561_v13 = vsel %vm560_vm7, %v923_v33, %v557_v39 }
 0x23d   :  { %v562_v40 = vmul.f32 %v561_v13, %v550_v38  ;;  %v686_v13 = vsub.f32 1.0, %v685_v35 }
 0x23f   :  { %v564_v43 = vmul.f32 %v562_v40, %v529_v29  ;;  %v567_v44 = vperm.slane %v562_v40, 0 }
 0x241   :  { %v565_v46 = vsub.f32 %v563_v41, %v564_v43  ;;  %v569_v45 = vmul.f32 %v567_v44, %v497_v54  ;;  %v570_v42 = vmul.f32 %v567_v44, %v1224_v22  ;;  %v571_v47 = vmul.f32 %v567_v44, %v1226_v49 }
 0x242   :  { %v572_v63 = vmul.f32 %v567_v44, %v1232_v53 }
 0x243   :  { %v574_v48 = vperm.slane %v565_v46, 0 }
 0x245   :  { %v576_v50 = vadd.f32 %v574_v48, %v569_v45  ;;  %v577_v51 = vadd.f32 %v574_v48, %v570_v42  ;;  %v578_v52 = vadd.f32 %v574_v48, %v571_v47  ;;  %v579_v24 = vadd.f32 %v574_v48, %v572_v63 }
 0x246   :  { %v687_v42 = vmul.f32 %v925_v34, %v686_v13 }
 0x247   :  { %v580_v55 = vmul.f32 0.2, %v576_v50  ;;  %v581_v56 = vmul.f32 0.2, %v577_v51  ;;  %v582_v57 = vmul.f32 0.2, %v578_v52 }
 0x248   :  { %v583_v58 = vmul.f32 0.2, %v579_v24 }
 0x249   :  { %v584_v60 = vmax.f32 %v576_v50, %v580_v55  ;;  %v585_v20 = vmax.f32 %v577_v51, %v581_v56  ;;  %v586_v59 = vmax.f32 %v578_v52, %v582_v57  ;;  %v688_v51 = vadd.f32 %v925_v34, %v687_v42 }
 0x24a   :  { %v587_v61 = vmax.f32 %v579_v24, %v583_v58 }
 0x24b   :  { %588 = vst.msk [vmem:[#allocation3] sm:$0xff] %vm456_vm2, %v584_v60  ;;  %v690_v57 = vsel %vm689_vm11, %v925_v34, %v688_v51 }
 0x24c   :  { %589 = vst.msk [vmem:[#allocation3 + $0x8] sm:$0xff] %vm456_vm2, %v585_v20 }
 0x24d   :  { %590 = vst.msk [vmem:[#allocation3 + $0x10] sm:$0xff] %vm456_vm2, %v586_v59 }
 0x24e   :  { %591 = vst.msk [vmem:[#allocation3 + $0x18] sm:$0xff] %vm456_vm2, %v587_v61 }
 0x252   :  { %v599_v1 = vld [vmem:[#allocation3 + $0x4] sm:$0xf]  ;;  %v592_v18 = vld [vmem:[#allocation3] sm:$0xf] }
 0x253   :  { %v600_v22 = vld [vmem:[#allocation3 + $0xc] sm:$0xf]  ;;  %v593_v2 = vld [vmem:[#allocation3 + $0x8] sm:$0xf] }
 0x254   :  { %v601_v49 = vld [vmem:[#allocation3 + $0x14] sm:$0xf]  ;;  %v594_v53 = vld [vmem:[#allocation3 + $0x10] sm:$0xf]  ;;  %v603_v54 = vrot.slane %v600_v22, 4  ;;  %v596_v16 = vrot.slane %v593_v2, 4 }
 0x255   :  { %615 = vrot.lane.b32.xlu1 %v601_v49, %s941_s1  ;;  %v608_v62 = vrot.slane %v594_v53, 4  ;;  %v606_v4 = vld [vmem:[#allocation3 + $0x18] sm:$0xf] }
 0x256   :  { %v605_v3 = vsel %vm374_vm1, %v599_v1, %v603_v54  ;;  %v598_v23 = vsel %vm374_vm1, %v592_v18, %v596_v16  ;;  %v749_v1 = vld [vmem:[%s1374_s4 + $0x28] sm:$0xff] }
 0x257   :  { %v610_v21 = vsel %vm374_vm1, %v593_v2, %v608_v62  ;;  %613 = vrot.lane.b32.xlu2 %v605_v3, %s941_s1  ;;  %v750_v62 = vld [vmem:[%s1374_s4 + $0x30] sm:$0xff]  ;;  %v748_v2 = vld [vmem:[%s1374_s4 + $0x20] sm:$0xff]  ;;  %v747_v3 = vld [vmem:[%s1374_s4 + $0x18] sm:$0xff] }
 0x258   :  { %621 = vrot.lane.b32.xlu0 %v610_v21, %s944_s6  ;;  %v746_v21 = vld [vmem:[%s1374_s4 + $0x10] sm:$0xff] }
 0x25f   :  { %623 = vrot.lane.b32.xlu2 %v606_v4, %s944_s6 }
 0x2b1   :  { %v614_v17 = vpop.permute.xlu2 %613 }
 0x2b2   :  { %v627_v26 = vsel %vm456_vm2, %v598_v23, %v614_v17 }
 0x2b9   :  { %v624_v31 = vpop.permute.xlu2 %623 }
 0x2c7   :  { %v616_v28 = vpop.permute.xlu1 %615 }
 0x2c8   :  { %v628_v30 = vsel %vm456_vm2, %v594_v53, %v616_v28  ;;  %v751_v53 = vld [vmem:[%s1374_s4 + $0x38] sm:$0xff] }
 0x2c9   :  { %v631_v19 = vsel %vm629_vm9, %v628_v30, %v624_v31  ;;  %763 = vmatpush.msra.mxu2 %v751_v53 }
 0x2ca   :  { %v622_v27 = vpop.permute.xlu0 %621 }
 0x2cb   :  { %v630_v29 = vsel %vm629_vm9, %v627_v26, %v622_v27  ;;  %764 = vmatpush.msra.mxu2 %v750_v62  ;;  %v799_v62 = vld [vmem:[%s1378_s10] sm:$0x1] }
 0x2cc   :  { %864 = vmatmul.msk.f32.vlgmr.msra.gmra.mxu1 %vm644_vm8, %v630_v29 }
 0x2cd   :  { %765 = vmatpush.msra.mxu2 %v749_v1 }
 0x2cf   :  { %766 = vmatpush.msra.mxu2 %v748_v2 }
 0x2d1   :  { %767 = vmatpush.msra.mxu2 %v747_v3 }
 0x2d3   :  { %768 = vmatpush.msra.mxu2 %v746_v21  ;;  %v812_v21 = vld [vmem:[%s1379_s11] sm:$0x1] }
 0x2d4   :  { %865 = vmatmul.msk.f32.gmra.mxu1 %vm644_vm8, %v631_v19 }
 0x2d5   :  { %769 = vmatpush.msra.mxu2 %v745_v5 }
 0x2d7   :  { %770 = vmatpush.msra.mxu2 %v744_v8 }
 0x349   :  { %v1305_v33 = vpop.f32.mrf.mxu1 }
 0x34a   :  { %v692_v36 = vmul.f32 %v1305_v33, %v1305_v33  ;;  %v674_v38 = vsel %vm629_vm9, %v1305_v33, 0.0 }
 0x34c   :  { %v694_v43 = vsel %vm629_vm9, %v692_v36, 0.0 }
 0x351   :  { %v1309_v37 = vpop.f32.mrf.mxu1 }
 0x352   :  { %v676_v39 = vsel %vm675_vm10, %v1309_v37, 0.0  ;;  %v693_v40 = vmul.f32 %v1309_v37, %v1309_v37 }
 0x353   :  { %v677_v41 = vadd.f32 %v676_v39, %v674_v38 }
 0x354   :  { %v695_v44 = vsel %vm675_vm10, %v693_v40, 0.0 }
 0x355   :  { %v678_v46 = vrot.slane %v677_v41, 4  ;;  %v696_v45 = vadd.f32 %v695_v44, %v694_v43 }
 0x357   :  { %v679_v47 = vadd.f32 %v678_v46, %v677_v41  ;;  %v697_v63 = vrot.slane %v696_v45, 4 }
 0x359   :  { %v680_v48 = vrot.slane %v679_v47, 2  ;;  %v698_v50 = vadd.f32 %v697_v63, %v696_v45 }
 0x35b   :  { %v681_v52 = vadd.f32 %v680_v48, %v679_v47  ;;  %v699_v24 = vrot.slane %v698_v50, 2 }
 0x35d   :  { %v682_v55 = vrot.slane %v681_v52, 1  ;;  %v700_v56 = vadd.f32 %v699_v24, %v698_v50 }
 0x35f   :  { %v683_v58 = vadd.f32 %v682_v55, %v681_v52  ;;  %v701_v60 = vrot.slane %v700_v56, 1 }
 0x361   :  { %v691_v20 = vmul.f32 %v690_v57, %v683_v58  ;;  %v702_v59 = vadd.f32 %v701_v60, %v700_v56 }
 0x363   :  { %v703_v61 = vmul.f32 %v702_v59, %v690_v57  ;;  %v704_v22 = vmul.f32 %v691_v20, %v691_v20 }
 0x365   :  { %v705_v49 = vsub.f32 %v703_v61, %v704_v22 }
 0x367   :  { %v707_v54 = vadd.f32 1e-05, %v705_v49 }
 0x369   :  { %926 = vrsqrt.f32 %v707_v54  ;;  %vm714_vm13 = vweird.f32 %v707_v54 }
 0x36f   :  { %v927_v4 = vpop.eup %926 }
 0x370   :  { %v709_v7 = vmul.f32 %v927_v4, %v707_v54  ;;  %vm715_vm12 = vweird.f32 %v927_v4 }
 0x371   :  { %vm716_vm14 = vmor %vm714_vm13, %vm715_vm12 }
 0x372   :  { %v710_v9 = vmul.f32 %v927_v4, %v709_v7 }
 0x374   :  { %v711_v10 = vmul.f32 0.5, %v710_v9 }
 0x376   :  { %v712_v6 = vsub.f32 1.5, %v711_v10 }
 0x378   :  { %v713_v0 = vmul.f32 %v927_v4, %v712_v6 }
 0x37a   :  { %v717_v12 = vsel %vm716_vm14, %v927_v4, %v713_v0  ;;  %v919_v0 = vld [vmem:[%s1377_s5] ss:$0 sm:$0xff] }
 0x37b   :  { %v718_v14 = vmul.f32 %v717_v12, %v706_v11 }
 0x37d   :  { %v720_v15 = vmul.f32 %v718_v14, %v691_v20  ;;  %v723_v16 = vperm.slane %v718_v14, 0 }
 0x37f   :  { %v721_v17 = vsub.f32 %v719_v25, %v720_v15  ;;  %v725_v18 = vmul.f32 %v723_v16, %v1305_v33  ;;  %v726_v23 = vmul.f32 %v723_v16, %v1309_v37  ;;  %v946_v33 = vmov 8.0  }
 0x380   :  { %928 = vrcp.f32 %v946_v33 }
 0x381   :  { %v728_v26 = vperm.slane %v721_v17, 0 }
 0x383   :  { %v730_v27 = vadd.f32 %v728_v26, %v725_v18  ;;  %v731_v29 = vadd.f32 %v728_v26, %v726_v23 }
 0x385   :  { %v732_v28 = vmul.f32 0.2, %v730_v27  ;;  %v733_v30 = vmul.f32 0.2, %v731_v29 }
 0x386   :  { %v929_v37 = vpop.eup %928 }
 0x387   :  { %v734_v31 = vmax.f32 %v730_v27, %v732_v28  ;;  %v735_v19 = vmax.f32 %v731_v29, %v733_v30  ;;  %v782_v38 = vmul.f32 8.0, %v929_v37  ;;  %vm786_vm15 = vweird.f32 %v929_v37 }
 0x389   :  { %736 = vst.msk [vmem:[#allocation4] sm:$0xff] %vm629_vm9, %v734_v31  ;;  %v783_v39 = vsub.f32 1.0, %v782_v38 }
 0x38a   :  { %737 = vst.msk [vmem:[#allocation4 + $0x8] sm:$0xf] %vm675_vm10, %v735_v19 }
 0x38b   :  { %v784_v43 = vmul.f32 %v929_v37, %v783_v39 }
 0x38d   :  { %v785_v47 = vadd.f32 %v929_v37, %v784_v43 }
 0x38f   :  { %v787_v52 = vsel %vm786_vm15, %v929_v37, %v785_v47 }
 0x390   :  { %v738_v35 = vld [vmem:[#allocation4] sm:$0xf] }
 0x391   :  { %v739_v32 = vld [vmem:[#allocation4 + $0x8] sm:$0xf] }
 0x392   :  { %v741_v34 = vrot.slane %v739_v32, 4 }
 0x394   :  { %v743_v36 = vsel %vm374_vm1, %v738_v35, %v741_v34 }
 0x395   :  { %866 = vmatmul.msk.f32.vlgmr.msra.gmra.mxu2 %vm629_vm9, %v743_v36 }
 0x418   :  { %v772_v13 = vpop.f32.mrf.mxu2 }
 0x419   :  { %v775_v40 = vrot.slane %v772_v13, 4  ;;  %v789_v41 = vmul.f32 %v772_v13, %v772_v13 }
 0x41b   :  { %v776_v44 = vadd.f32 %v775_v40, %v772_v13  ;;  %v790_v46 = vrot.slane %v789_v41, 4 }
 0x41d   :  { %v777_v45 = vrot.slane %v776_v44, 2  ;;  %v791_v42 = vadd.f32 %v790_v46, %v789_v41 }
 0x41f   :  { %v778_v63 = vadd.f32 %v777_v45, %v776_v44  ;;  %v792_v48 = vrot.slane %v791_v42, 2 }
 0x421   :  { %v779_v50 = vrot.slane %v778_v63, 1  ;;  %v793_v51 = vadd.f32 %v792_v48, %v791_v42 }
 0x423   :  { %v780_v24 = vadd.f32 %v779_v50, %v778_v63  ;;  %v794_v55 = vrot.slane %v793_v51, 1 }
 0x425   :  { %v788_v56 = vmul.f32 %v787_v52, %v780_v24  ;;  %v795_v57 = vadd.f32 %v794_v55, %v793_v51 }
 0x427   :  { %v796_v58 = vmul.f32 %v795_v57, %v787_v52  ;;  %v797_v60 = vmul.f32 %v788_v56, %v788_v56 }
 0x429   :  { %v798_v20 = vsub.f32 %v796_v58, %v797_v60 }
 0x42b   :  { %v800_v59 = vadd.f32 1e-05, %v798_v20 }
 0x42d   :  { %930 = vrsqrt.f32 %v800_v59  ;;  %vm807_vm2 = vweird.f32 %v800_v59 }
 0x433   :  { %v931_v61 = vpop.eup %930 }
 0x434   :  { %v802_v22 = vmul.f32 %v931_v61, %v800_v59  ;;  %vm808_vm0 = vweird.f32 %v931_v61 }
 0x435   :  { %vm809_vm3 = vmor %vm807_vm2, %vm808_vm0 }
 0x436   :  { %v803_v49 = vmul.f32 %v931_v61, %v802_v22 }
 0x438   :  { %v804_v53 = vmul.f32 0.5, %v803_v49 }
 0x43a   :  { %v805_v54 = vsub.f32 1.5, %v804_v53 }
 0x43c   :  { %v806_v1 = vmul.f32 %v931_v61, %v805_v54 }
 0x43e   :  { %v810_v2 = vsel %vm809_vm3, %v931_v61, %v806_v1 }
 0x43f   :  { %v811_v3 = vmul.f32 %v810_v2, %v799_v62 }
 0x441   :  { %v813_v4 = vmul.f32 %v811_v3, %v788_v56  ;;  %v816_v5 = vperm.slane %v811_v3, 0 }
 0x443   :  { %v814_v7 = vsub.f32 %v812_v21, %v813_v4  ;;  %v818_v8 = vmul.f32 %v816_v5, %v772_v13 }
 0x445   :  { %v820_v9 = vperm.slane %v814_v7, 0 }
 0x447   :  { %v822_v10 = vadd.f32 %v820_v9, %v818_v8 }
 0x449   :  { %v823_v6 = vmul.f32 0.2, %v822_v10 }
 0x44b   :  { %v824_v11 = vmax.f32 %v822_v10, %v823_v6 }
 0x44d   :  { %825 = vst [vmem:[#allocation5] sm:$0xff] %v824_v11 }
 0x454   :  { %v827_v12 = vld [vmem:[#allocation5] sm:$0xf] }
 0x455   :  { %v831_v14 = vmul.f32 %v919_v0, %v827_v12 }
 0x457   :  { %v832_v25 = vsel %vm374_vm1, %v831_v14, 0.0 }
 0x458   :  { %833 = vadd.xlane.f32.xlu0 %v832_v25 }
 0x4cb   :  { %v834_v15 = vpop.xlane.xlu0 %833 }
 0x4cc   :  { %v835_v16 = vsub.f32 0.0, %v834_v15 }
 0x4ce   :  { %v836_v17 = vmul.f32 1.442695, %v835_v16 }
 0x4d0   :  { %932 = vpow2.f32 %v836_v17 }
 0x4d6   :  { %v933_v18 = vpop.eup %932 }
 0x4d7   :  { %v838_v23 = vadd.f32 1.0, %v933_v18 }
 0x4d9   :  { %934 = vrcp.f32 %v838_v23  ;;  %v850_v28 = vand.u32 2147483648, %v838_v23  ;;  %v848_v31 = vand.u32 2147483647, %v838_v23  ;;  %vm844_vm5 = vweird.f32 %v838_v23 }
 0x4db   :  { %v851_v32 = vor.u32 1.1754944e-38, %v850_v28  ;;  %vm849_vm1 = vcmp.eq.f32.partialorder %v848_v31, 8.507059e+37 }
 0x4df   :  { %v935_v26 = vpop.eup %934 }
 0x4e0   :  { %v840_v27 = vmul.f32 %v935_v26, %v838_v23  ;;  %vm845_vm4 = vweird.f32 %v935_v26 }
 0x4e1   :  { %vm846_vm7 = vmor %vm844_vm5, %vm845_vm4 }
 0x4e2   :  { %v841_v29 = vsub.f32 1.0, %v840_v27 }
 0x4e4   :  { %v842_v30 = vmul.f32 %v935_v26, %v841_v29 }
 0x4e6   :  { %v843_v19 = vadd.f32 %v935_v26, %v842_v30 }
 0x4e8   :  { %v847_v34 = vsel %vm846_vm7, %v935_v26, %v843_v19 }
 0x4e9   :  { %v852_v35 = vsel %vm849_vm1, %v851_v32, %v847_v34 }
 0x4ea   :  { %855 = vst.msk [vmem:[%s1380_s12] sm:$0xf] %vm854_vm6, %v852_v35 }

</bundles_post_ra>
